<compile_context>
chip_gen: v7x
topology: tpu7x:2x2x1
jax: 0.10.0
libtpu: 0.0.40
codegen_flags: <defaults>
</compile_context>

<pallas_src>
import functools

import jax
import jax.numpy as jnp
from jax.experimental import pallas as pl
from jax.experimental.pallas import tpu as pltpu


def _conv1x1_bn_kernel(x_ref, w_ref, shift_ref, o_ref):
    # x_ref:     (Cin, TS)   activation tile (channels x spatial)
    # w_ref:     (Cout, Cin) BN-scale-folded 1x1 conv weight
    # shift_ref: (Cout, 1)   folded BN shift
    # o_ref:     (Cout, TS)  lane-dense output tile
    acc = jnp.dot(w_ref[...], x_ref[...], preferred_element_type=jnp.float32)
    o_ref[...] = (acc + shift_ref[...]).astype(o_ref.dtype)


def _choose_spatial_tile(S, cin, cout, vmem_budget_bytes=12 * 1024 * 1024):
    """Largest power-of-two multiple of 128 that divides S and fits VMEM.

    Falls back to the full extent S when S is not 128-aligned (full-extent
    blocks are always legal, and these shapes are small in practice).
    """
    if S % 128 != 0:
        return S
    # Double-buffered input + output columns (f32).
    bytes_per_col = (cin + cout) * 4 * 2
    max_ts = max(128, (vmem_budget_bytes // bytes_per_col) // 128 * 128)
    ts = 128
    while ts * 2 <= min(S, max_ts) and S % (ts * 2) == 0:
        ts *= 2
    return ts


def conv1x1_bn_pallas(x3, w_scaled, shift):
    """x3: (N, Cin, S) f32; w_scaled: (Cout, Cin); shift: (Cout, 1) -> (N, Cout, S)."""
    N, Cin, S = x3.shape
    Cout = w_scaled.shape[0]
    TS = _choose_spatial_tile(S, Cin, Cout)
    grid = (N, S // TS)

    return pl.pallas_call(
        _conv1x1_bn_kernel,
        out_shape=jax.ShapeDtypeStruct((N, Cout, S), x3.dtype),
        grid_spec=pltpu.PrefetchScalarGridSpec(
            num_scalar_prefetch=0,
            grid=grid,
            in_specs=[
                # Batch dim squeezed out of the kernel view (size-1 block).
                pl.BlockSpec((None, Cin, TS), lambda n, s: (n, 0, s)),
                # Constant index maps -> weight/shift stay resident in VMEM.
                pl.BlockSpec((Cout, Cin), lambda n, s: (0, 0)),
                pl.BlockSpec((Cout, 1), lambda n, s: (0, 0)),
            ],
            out_specs=pl.BlockSpec((None, Cout, TS), lambda n, s: (n, 0, s)),
        ),
        compiler_params=pltpu.CompilerParams(
            dimension_semantics=("parallel", "parallel")),
    )(x3, w_scaled, shift)


@functools.partial(jax.jit, static_argnames=("flagcentercrop", "center_size", "eps"))
def adjust_flag_center_crop(x, weight, gamma, beta, running_mean, running_var,
                            *, flagcentercrop=False, center_size=9, eps=1e-5):
    """Forward pass of AdjustFlagCenterCrop.

    x: (N, Cin, H, W) NCHW float32
    weight: (Cout, Cin, 1, 1)  -- Conv2d 1x1, bias=False
    gamma/beta/running_mean/running_var: (Cout,)  -- BatchNorm2d (running stats)
    """
    N, Cin, H, W = x.shape
    Cout = weight.shape[0]

    if flagcentercrop:
        # 1x1 conv + per-channel affine commute with spatial slicing, so crop
        # the input first (same offsets as the PyTorch module, which derives
        # both offsets from size(3) == W).
        l = (W - center_size) // 2
        r = l + center_size
        x = x[:, :, l:r, l:r]
        H = W = center_size

    S = H * W

    # Fold BN into the weight (scale) and a per-channel shift.
    inv_std = jax.lax.rsqrt(running_var + eps)
    scale = gamma * inv_std                                  # (Cout,)
    shift = (beta - running_mean * scale).reshape(Cout, 1)   # (Cout, 1)
    w_scaled = weight.reshape(Cout, Cin) * scale[:, None]    # (Cout, Cin), tiny

    # NCHW -> (N, Cin, H*W): pure reshape, no transpose.
    x3 = x.reshape(N, Cin, S)

    out3 = conv1x1_bn_pallas(x3, w_scaled, shift)            # (N, Cout, S)
    return out3.reshape(N, Cout, H, W)                       # pure reshape back


def _reference(x, weight, gamma, beta, running_mean, running_var,
               flagcentercrop=False, center_size=9, eps=1e-5):
    # Pure-JAX reference (crop AFTER conv+BN, exactly like the PyTorch module).
    y = jnp.einsum("nchw,oc->nohw", x,
                   weight.reshape(weight.shape[0], weight.shape[1]))
    scale = gamma / jnp.sqrt(running_var + eps)
    shift = beta - running_mean * scale
    y = y * scale[None, :, None, None] + shift[None, :, None, None]
    if flagcentercrop:
        W = y.shape[3]
        l = (W - center_size) // 2
        r = l + center_size
        y = y[:, :, l:r, l:r]
    return y


if __name__ == "__main__":
    # Small shapes consistent with the module: N=2, Cin=16, Cout=32, H=W=16.
    N, Cin, Cout, H, W = 2, 16, 32, 16, 16
    center_size = 9

    key = jax.random.PRNGKey(0)
    kx, kw, kg, kb, km, kv = jax.random.split(key, 6)

    x = jax.random.normal(kx, (N, Cin, H, W), dtype=jnp.float32)
    weight = jax.random.normal(kw, (Cout, Cin, 1, 1), dtype=jnp.float32) * 0.1
    gamma = jax.random.uniform(kg, (Cout,), dtype=jnp.float32, minval=0.5, maxval=1.5)
    beta = jax.random.normal(kb, (Cout,), dtype=jnp.float32) * 0.1
    running_mean = jax.random.normal(km, (Cout,), dtype=jnp.float32) * 0.1
    running_var = jax.random.uniform(kv, (Cout,), dtype=jnp.float32, minval=0.5, maxval=1.5)

    # No-crop path (lane-dense, 128-aligned spatial blocks).
    out = adjust_flag_center_crop(x, weight, gamma, beta, running_mean,
                                  running_var, flagcentercrop=False,
                                  center_size=center_size)
    out = jax.block_until_ready(out)
    ref = _reference(x, weight, gamma, beta, running_mean, running_var,
                     flagcentercrop=False, center_size=center_size)
    assert out.shape == (N, Cout, H, W), out.shape
    assert jnp.allclose(out, ref, atol=1e-4, rtol=1e-4)

    # Center-crop path (crop-before-conv; full-extent non-128-aligned block).
    out_c = adjust_flag_center_crop(x, weight, gamma, beta, running_mean,
                                    running_var, flagcentercrop=True,
                                    center_size=center_size)
    out_c = jax.block_until_ready(out_c)
    ref_c = _reference(x, weight, gamma, beta, running_mean, running_var,
                       flagcentercrop=True, center_size=center_size)
    assert out_c.shape == (N, Cout, center_size, center_size), out_c.shape
    assert jnp.allclose(out_c, ref_c, atol=1e-4, rtol=1e-4)

    print("KERNEL_OK")
</pallas_src>

<mosaic_0001>
module attributes {stable_mosaic.version = 11 : i64} {
  func.func @_conv1x1_bn_kernel(%arg0: i32, %arg1: i32, %arg2: memref<1x16x256xf32, #tpu.memory_space<vmem>>, %arg3: memref<32x16xf32, #tpu.memory_space<vmem>>, %arg4: memref<32x1xf32, #tpu.memory_space<vmem>>, %arg5: memref<1x32x256xf32, #tpu.memory_space<vmem>>) attributes {dimension_semantics = [#tpu.dimension_semantics<parallel>, #tpu.dimension_semantics<parallel>], iteration_bounds = array<i64: 2, 1>, scalar_prefetch = 0 : i64, scratch_operands = 0 : i64, tpu.core_type = #tpu.core_type<tc>, window_params = [{transform_indices = @transform_0, window_bounds = array<i64: 1, 16, 256>}, {pipeline_mode = #tpu.pipeline_mode<synchronous>, transform_indices = @transform_1, window_bounds = array<i64: 32, 16>}, {pipeline_mode = #tpu.pipeline_mode<synchronous>, transform_indices = @transform_2, window_bounds = array<i64: 32, 1>}, {transform_indices = @transform_3, window_bounds = array<i64: 1, 32, 256>}]} {
    %c0 = arith.constant 0 : index
    %c0_0 = arith.constant 0 : index
    %0 = vector.load %arg3[%c0, %c0_0] : memref<32x16xf32, #tpu.memory_space<vmem>>, vector<32x16xf32>
    %c0_1 = arith.constant 0 : index
    %c0_2 = arith.constant 0 : index
    %c0_3 = arith.constant 0 : index
    %1 = vector.load %arg2[%c0_1, %c0_2, %c0_3] : memref<1x16x256xf32, #tpu.memory_space<vmem>>, vector<1x16x256xf32>
    %2 = vector.shape_cast %1 : vector<1x16x256xf32> to vector<16x256xf32>
    %cst = arith.constant dense<0.000000e+00> : vector<32x256xf32>
    %3 = tpu.matmul %0, %2, %cst {dimension_numbers = #tpu.dot_dimension_numbers<[1], [0], [0], [1], [0, 0, 1, 1], [], []>} : vector<32x16xf32>, vector<16x256xf32>, vector<32x256xf32> -> vector<32x256xf32>
    %c0_4 = arith.constant 0 : index
    %c0_5 = arith.constant 0 : index
    %4 = vector.load %arg4[%c0_4, %c0_5] : memref<32x1xf32, #tpu.memory_space<vmem>>, vector<32x1xf32>
    %5 = vector.broadcast %4 : vector<32x1xf32> to vector<32x256xf32>
    %6 = arith.addf %3, %5 : vector<32x256xf32>
    %c0_6 = arith.constant 0 : index
    %c0_7 = arith.constant 0 : index
    %c0_8 = arith.constant 0 : index
    %7 = vector.load %arg5[%c0_6, %c0_7, %c0_8] : memref<1x32x256xf32, #tpu.memory_space<vmem>>, vector<1x32x256xf32>
    %8 = vector.shape_cast %7 : vector<1x32x256xf32> to vector<32x256xf32>
    %9 = vector.shape_cast %6 : vector<32x256xf32> to vector<1x32x256xf32>
    tpu.vector_store %arg5[%c0_6, %c0_7, %c0_8], %9 {strides = array<i32>} : memref<1x32x256xf32, #tpu.memory_space<vmem>>, vector<1x32x256xf32>,
    return
  }
  func.func @transform_0(%arg0: i32, %arg1: i32) -> (i32, i32, i32) {
    %c0_i32 = arith.constant 0 : i32
    %c0_i32_0 = arith.constant 0 : i32
    return %arg0, %c0_i32, %arg1 : i32, i32, i32
  }
  func.func @transform_1(%arg0: i32, %arg1: i32) -> (i32, i32) {
    %c0_i32 = arith.constant 0 : i32
    %c0_i32_0 = arith.constant 0 : i32
    %c0_i32_1 = arith.constant 0 : i32
    return %c0_i32, %c0_i32_0 : i32, i32
  }
  func.func @transform_2(%arg0: i32, %arg1: i32) -> (i32, i32) {
    %c0_i32 = arith.constant 0 : i32
    %c0_i32_0 = arith.constant 0 : i32
    %c0_i32_1 = arith.constant 0 : i32
    return %c0_i32, %c0_i32_0 : i32, i32
  }
  func.func @transform_3(%arg0: i32, %arg1: i32) -> (i32, i32, i32) {
    %c0_i32 = arith.constant 0 : i32
    %c0_i32_0 = arith.constant 0 : i32
    return %arg0, %c0_i32, %arg1 : i32, i32, i32
  }
}

</mosaic_0001>

<bundles_post_ra>
// kernel: adjust_flag_center_crop.1
= control target key start
LH: loop header
LB: loop body
LE: loop exit
PB: predicated region body
PF: predicated region fallthrough
CT: control target
= control target key end

     0   :  { %s536_s12 = smov 0   ;;  %s538_s13 = smov 0   ;;  %s597_s0 = inlined_call_operand.vmem [shape: f32[2,16,256], index: 0, kind: input, shape index: {}]   ;;  %s598_s1 = inlined_call_operand.vmem [shape: f32[32,16], index: 1, kind: input, shape index: {}]   ;;  %s599_s2 = inlined_call_operand.vmem [shape: f32[32,1], index: 2, kind: input, shape index: {}]   ;;  %s600_s3 = inlined_call_operand.vmem [shape: f32[2,32,256], index: 3, kind: output, shape index: {}]  }
   0x1   :  { %s540_s14 = smov 0  }
   0x2 LB: > { %s25_s15 = sadd.s32 1, %s508_s13  ;;  %p443_p0 = scmp.ge.s32.totalorder %s512_s14, 1  ;;  %s512_s14 = sphi %s540_s14, %s13_s14   ;;  %s508_s13 = sphi %s538_s13, %s602_s13   ;;  %s504_s12 = sphi %s536_s12, %s601_s12  }
   0x3   : > { %p27_p1 = scmp.ge.s32.totalorder %s25_s15, 2  ;;  %p158_p2 = scmp.lt.s32.totalorder %s512_s14, 3 }
   0x5   : > { %s604_s15 = smov (%p27_p1, %s25_s15), 0  ;;  %p159_p3 = pnand %p443_p0, %p158_p2 }
   0x6   : > { %p191_p4 = scmp.lt.s32.totalorder (!%p159_p3), %s504_s12, 1  ;;  %v514_v0 = vmov (!%p159_p3), 0.0   ;;  %v220_v1 = vld [vmem:[%s599_s2 + $0x10] sm:$0xff] (!%p159_p3)  ;;  %v218_v2 = vld [vmem:[%s599_s2] sm:$0xff] (!%p159_p3)  ;;  %v515_v3 = vmov (!%p159_p3), 0   ;;  %v221_v4 = vld [vmem:[%s599_s2 + $0x18] sm:$0xff] (!%p159_p3) }
   0x7   : > { %162 = sbr.rel (%p159_p3) target bundleno = 244 (0xf4), region = 32  ;;  %319 = vmatprep.mubr.f32.mxu0 (!%p159_p3), %v514_v0  ;;  %331 = vmatprep.mubr.f32.mxu1 (!%p159_p3), %v514_v0  ;;  %v219_v5 = vld [vmem:[%s599_s2 + $0x8] sm:$0xff] (!%p159_p3)  ;;  %v210_v12 = vld [vmem:[%s598_s1] sm:$0xff] (!%p159_p3)  ;;  %vm242_vm0 = vcmask (!%p159_p3), 130048   ;;  %v212_v13 = vld [vmem:[%s598_s1 + $0x10] sm:$0xff] (!%p159_p3) }
   0x8   : > { %489 = vset.pattern.permute.xlu1 (!%p159_p3), %v515_v3  ;;  %488 = vset.pattern.permute.xlu0 (!%p159_p3), %v515_v3  ;;  %v211_v14 = vld [vmem:[%s598_s1 + $0x8] sm:$0xff] (!%p159_p3)  ;;  %v213_v15 = vld [vmem:[%s598_s1 + $0x18] sm:$0xff] (!%p159_p3) }
   0x9   : > { %234 = vperm.xlu1 (!%p159_p3), %489, %v220_v1   ;;  %224 = vperm.xlu0 (!%p159_p3), %488, %v218_v2  }
   0xd   : > { %239 = vperm.xlu1 (!%p159_p3), %489, %v221_v4   ;;  %229 = vperm.xlu0 (!%p159_p3), %488, %v219_v5  }
   0xe   : > { %s606_s12 = smov (!%p191_p4, %s504_s12), 1 }
   0xf   : > { %s454_s20 = sshll.u32 %s606_s12, 5  ;;  %s455_s9 = sshll.u32 %s606_s12, 6 }
  0x10   : > { %s198_s27 = scalar_lea.vmem %s597_s0, %s454_s20  ;;  %s208_s16 = scalar_lea.vmem %s600_s3, %s455_s9 }
  0x11   : > { %v215_v6 = vld [vmem:[%s198_s27 + $0x8] sm:$0xff]  ;;  %v217_v7 = vld [vmem:[%s198_s27 + $0x18] sm:$0xff]  ;;  %v214_v8 = vld [vmem:[%s198_s27] sm:$0xff] }
  0x12   : > { %v456_v9 = vpack.c.bf16 %v217_v7, %v215_v6  ;;  %v216_v10 = vld [vmem:[%s198_s27 + $0x10] sm:$0xff] }
  0x13   : > { %v458_v11 = vpack.c.bf16 %v216_v10, %v214_v8 }
  0x14   : > { %457 = vmatprep.subr.bf16.mxu0 %v456_v9  ;;  %460 = vmatprep.subr.bf16.mxu1 %v456_v9 }
  0x15   : > { %459 = vmatpush1.bf16.msra.mxu0 %v458_v11  ;;  %461 = vmatpush1.bf16.msra.mxu1 %v458_v11 }
  0x18   : > { %448 = vmatmul.mubr.msk.f32.vlgmr.msra.gmra.mrb[0].mxu0 %vm242_vm0, %v210_v12  ;;  %450 = vmatmul.mubr.msk.f32.vlgmr.msra.gmra.mrb[0].mxu1 %vm242_vm0, %v212_v13 }
  0x19   : > { %325 = vmatprep.mubr.f32.mxu0 %v514_v0  ;;  %337 = vmatprep.mubr.f32.mxu1 %v514_v0 }
  0x1c   : > { %449 = vmatmul.mubr.msk.f32.gmra.mrb[2].mxu0 %vm242_vm0, %v211_v14  ;;  %451 = vmatmul.mubr.msk.f32.gmra.mrb[2].mxu1 %vm242_vm0, %v213_v15 }
  0x88   : > { %v235_v16 = vpop.permute.xlu1 %234  ;;  %v225_v17 = vpop.permute.xlu0 %224 }
  0x8c   : > { %v240_v26 = vpop.permute.xlu1 %239  ;;  %v230_v27 = vpop.permute.xlu0 %229 }
  0xeb   : > { %v321_v18 = vpop.f32.mrb[0].mxu0  ;;  %v333_v19 = vpop.f32.mrb[0].mxu1 }
  0xec   : > { %v322_v20 = vadd.f32 %v321_v18, %v225_v17  ;;  %v334_v21 = vadd.f32 %v333_v19, %v235_v16  ;;  %v323_v22 = vpop.f32.mrb[1].mxu0  ;;  %v335_v23 = vpop.f32.mrb[1].mxu1 }
  0xed   : > { %v324_v24 = vadd.f32 %v323_v22, %v225_v17  ;;  %v336_v25 = vadd.f32 %v335_v23, %v235_v16 }
  0xee   : > { %344 = vst [vmem:[%s208_s16] sm:$0xff] %v322_v20  ;;  %348 = vst [vmem:[%s208_s16 + $0x20] sm:$0xff] %v334_v21 }
  0xef   : > { %345 = vst [vmem:[%s208_s16 + $0x8] sm:$0xff] %v324_v24  ;;  %349 = vst [vmem:[%s208_s16 + $0x28] sm:$0xff] %v336_v25  ;;  %v327_v28 = vpop.f32.mrb[2].mxu0  ;;  %v339_v29 = vpop.f32.mrb[2].mxu1 }
  0xf0   : > { %v328_v30 = vadd.f32 %v327_v28, %v230_v27  ;;  %v340_v31 = vadd.f32 %v339_v29, %v240_v26  ;;  %v329_v32 = vpop.f32.mrb[3].mxu0  ;;  %v341_v33 = vpop.f32.mrb[3].mxu1 }
  0xf1   : > { %v330_v34 = vadd.f32 %v329_v32, %v230_v27  ;;  %v342_v35 = vadd.f32 %v341_v33, %v240_v26 }
  0xf2   : > { %346 = vst [vmem:[%s208_s16 + $0x10] sm:$0xff] %v328_v30  ;;  %350 = vst [vmem:[%s208_s16 + $0x30] sm:$0xff] %v340_v31 }
  0xf3   : > { %347 = vst [vmem:[%s208_s16 + $0x18] sm:$0xff] %v330_v34  ;;  %351 = vst [vmem:[%s208_s16 + $0x38] sm:$0xff] %v342_v35 }
  0xf4 PF: > { %s13_s14 = sadd.s32 1, %s512_s14   ;;  %s601_s12 = smov %s508_s13 }
  0xf5   : > { %p10_p5 = scmp.ge.s32.totalorder %s13_s14, 4   ;;  %s602_s13 = smov %s604_s15 }
  0xf7   :  { %12 = sbr.rel (!%p10_p5) target bundleno = 2 (0x2), region = 62 }

</bundles_post_ra>
